<compile_context>
chip_gen: v7x
topology: tpu7x:2x2x1
jax: 0.10.0
libtpu: 0.0.40
codegen_flags: <defaults>
</compile_context>

<pallas_src>
import jax
import jax.numpy as jnp
from jax import lax
from jax.experimental import pallas as pl
from jax.experimental.pallas import tpu as pltpu


# --------------------------- fused forward kernel ----------------------------
def _make_water_lstm_kernel(S, B, I, H, L):
    G = 4 * H

    def kernel(*refs):
        # refs = [x, (wih_t, whh_t, b) * L, w1_t, b1, w2p_t, b2p,   (inputs)
        #         out,                                              (output)
        #         xp_sc (, seq_sc if L > 1)]                        (scratch)
        x_ref = refs[0]
        lw = refs[1:1 + 3 * L]
        w1_ref, b1_ref, w2_ref, b2_ref = refs[1 + 3 * L:5 + 3 * L]
        out_ref = refs[5 + 3 * L]
        xp_sc = refs[6 + 3 * L]
        seq_sc = refs[7 + 3 * L] if L > 1 else None

        hn_rows = []
        for l in range(L):
            wih = lw[3 * l][...]                                   # (in_dim, 4H)
            whh = lw[3 * l + 1][...]                               # (H, 4H)
            b = lw[3 * l + 2][...]                                 # (1, 4H)

            if l == 0:
                inp = x_ref[...].reshape(S * B, I)                 # (S*B, I)
            else:
                inp = seq_sc[...].reshape(S * B, H)                # (S*B, H)

            # Hoisted input projection: one matmul for the whole sequence.
            xp = jnp.dot(inp, wih, preferred_element_type=jnp.float32) + b
            xp_sc[...] = xp.reshape(S, B, G)

            def step(t, carry, l=l, whh=whh):
                h, c = carry
                gates = xp_sc[t] + jnp.dot(
                    h, whh, preferred_element_type=jnp.float32)    # (B, 4H)
                # One full-width sigmoid + one full-width tanh (2 EUP passes),
                # then static lane slices (i, f, g, o) of the single gate vreg.
                sig = jax.nn.sigmoid(gates)
                tnh = jnp.tanh(gates)
                i_g = sig[:, 0 * H:1 * H]
                f_g = sig[:, 1 * H:2 * H]
                g_g = tnh[:, 2 * H:3 * H]
                o_g = sig[:, 3 * H:4 * H]
                c_new = f_g * c + i_g * g_g
                h_new = o_g * jnp.tanh(c_new)
                if l < L - 1:                      # only inner layers need the
                    seq_sc[t] = h_new              # hidden sequence (VMEM only)
                return h_new, c_new

            zeros = jnp.zeros((B, H), jnp.float32)
            h_last, _ = lax.fori_loop(0, S, step, (zeros, zeros), unroll=True)
            hn_rows.append(h_last)

        hn = hn_rows[0] if L == 1 else jnp.concatenate(hn_rows, axis=0)  # (L*B, H)

        # Fused head: ReLU -> fc_1 -> ReLU -> fc (fc padded to 128 lanes).
        z = jnp.maximum(hn, 0.0)
        z = jnp.dot(z, w1_ref[...], preferred_element_type=jnp.float32) + b1_ref[...]
        z = jnp.maximum(z, 0.0)
        out = jnp.dot(z, w2_ref[...], preferred_element_type=jnp.float32) + b2_ref[...]
        out_ref[...] = out.astype(out_ref.dtype)   # single lane-dense store

    return kernel


def water_lstm_forward(x, params):
    S, B, I = x.shape
    L = len(params["lstm"])
    H = params["lstm"][0][1].shape[0]
    F = params["w1_t"].shape[0 + 1]
    C = params["w2_t"].shape[1]
    CP = pl.cdiv(C, 128) * 128                     # lane-dense padded head out

    # Zero-pad the final projection so the kernel's only HBM store is a full
    # 128-lane slab (sliced back to C outside).
    w2p = jnp.zeros((F, CP), jnp.float32).at[:, :C].set(params["w2_t"])
    b2p = jnp.zeros((1, CP), jnp.float32).at[:, :C].set(params["b2"])

    flat_lstm = [w for layer in params["lstm"] for w in layer]
    n_in = 1 + 3 * L + 4
    vmem = pl.BlockSpec(memory_space=pltpu.MemorySpace.VMEM)

    scratch_shapes = [pltpu.VMEM((S, B, 4 * H), jnp.float32)]      # x_proj
    if L > 1:
        scratch_shapes.append(pltpu.VMEM((S, B, H), jnp.float32))  # hidden seq

    out = pl.pallas_call(
        _make_water_lstm_kernel(S, B, I, H, L),
        out_shape=jax.ShapeDtypeStruct((L * B, CP), jnp.float32),
        in_specs=[vmem] * n_in,
        out_specs=vmem,
        scratch_shapes=scratch_shapes,
        compiler_params=pltpu.CompilerParams(
            vmem_limit_bytes=32 * 1024 * 1024),
    )(x, *flat_lstm, params["w1_t"], params["b1"], w2p, b2p)

    return out[:, :C].reshape(L, B, C)             # (num_layers, B, num_classes)


# ------------------------------ params / ref ----------------------------------
def init_params(key, input_size, hidden_size, num_classes, num_layers):
    ks = jax.random.split(key, 3 * num_layers + 4)
    k_lstm = float(hidden_size) ** -0.5
    lstm = []
    for l in range(num_layers):
        in_dim = input_size if l == 0 else hidden_size
        wih_t = jax.random.uniform(ks[3 * l + 0], (in_dim, 4 * hidden_size),
                                   minval=-k_lstm, maxval=k_lstm)
        whh_t = jax.random.uniform(ks[3 * l + 1], (hidden_size, 4 * hidden_size),
                                   minval=-k_lstm, maxval=k_lstm)
        b = jax.random.uniform(ks[3 * l + 2], (1, 4 * hidden_size),
                               minval=-k_lstm, maxval=k_lstm)
        lstm.append((wih_t, whh_t, b))
    k1 = float(hidden_size) ** -0.5
    k2 = float(128) ** -0.5
    w1_t = jax.random.uniform(ks[-4], (hidden_size, 128), minval=-k1, maxval=k1)
    b1 = jax.random.uniform(ks[-3], (1, 128), minval=-k1, maxval=k1)
    w2_t = jax.random.uniform(ks[-2], (128, num_classes), minval=-k2, maxval=k2)
    b2 = jax.random.uniform(ks[-1], (1, num_classes), minval=-k2, maxval=k2)
    return {"lstm": lstm, "w1_t": w1_t, "b1": b1, "w2_t": w2_t, "b2": b2}


def _ref_forward(x, params):
    def layer(xs, wih_t, whh_t, b):
        S, B, _ = xs.shape
        H = whh_t.shape[0]

        def step(carry, x_t):
            h, c = carry
            gates = x_t @ wih_t + h @ whh_t + b
            i = jax.nn.sigmoid(gates[:, :H])
            f = jax.nn.sigmoid(gates[:, H:2 * H])
            g = jnp.tanh(gates[:, 2 * H:3 * H])
            o = jax.nn.sigmoid(gates[:, 3 * H:])
            c = f * c + i * g
            h = o * jnp.tanh(c)
            return (h, c), h

        init = (jnp.zeros((B, H), jnp.float32), jnp.zeros((B, H), jnp.float32))
        _, ys = lax.scan(step, init, xs)
        return ys

    hs, inp = [], x
    for (wih_t, whh_t, b) in params["lstm"]:
        ys = layer(inp, wih_t, whh_t, b)
        hs.append(ys[-1])
        inp = ys
    hn = jnp.stack(hs, axis=0)
    out = jnp.maximum(hn, 0.0) @ params["w1_t"] + params["b1"]
    out = jnp.maximum(out, 0.0) @ params["w2_t"] + params["b2"]
    return out


if __name__ == "__main__":
    input_size, hidden_size, seq_length = 16, 32, 8
    num_classes, num_layers, batch = 4, 1, 2

    key = jax.random.PRNGKey(0)
    kx, kp = jax.random.split(key)
    x = jax.random.normal(kx, (seq_length, batch, input_size), dtype=jnp.float32)
    params = init_params(kp, input_size, hidden_size, num_classes, num_layers)

    fwd = jax.jit(water_lstm_forward)
    out = jax.block_until_ready(fwd(x, params))

    ref = jax.block_until_ready(_ref_forward(x, params))
    assert out.shape == (num_layers, batch, num_classes), out.shape
    assert jnp.allclose(out, ref, rtol=1e-5, atol=1e-5), (
        f"max abs err {jnp.max(jnp.abs(out - ref))}")

    print("KERNEL_OK")
</pallas_src>

<mosaic_0001>
module attributes {stable_mosaic.version = 11 : i64} {
  func.func @kernel(%arg0: memref<8x2x16xf32, #tpu.memory_space<vmem>>, %arg1: memref<16x128xf32, #tpu.memory_space<vmem>>, %arg2: memref<32x128xf32, #tpu.memory_space<vmem>>, %arg3: memref<1x128xf32, #tpu.memory_space<vmem>>, %arg4: memref<32x128xf32, #tpu.memory_space<vmem>>, %arg5: memref<1x128xf32, #tpu.memory_space<vmem>>, %arg6: memref<128x128xf32, #tpu.memory_space<vmem>>, %arg7: memref<1x128xf32, #tpu.memory_space<vmem>>, %arg8: memref<2x128xf32, #tpu.memory_space<vmem>>, %arg9: memref<8x2x128xf32, #tpu.memory_space<vmem>>) attributes {dimension_semantics = [], scalar_prefetch = 0 : i64, scratch_operands = 1 : i64, tpu.core_type = #tpu.core_type<tc>} {
    %c0 = arith.constant 0 : index
    %c0_0 = arith.constant 0 : index
    %0 = vector.load %arg1[%c0, %c0_0] : memref<16x128xf32, #tpu.memory_space<vmem>>, vector<16x128xf32>
    %c0_1 = arith.constant 0 : index
    %c0_2 = arith.constant 0 : index
    %1 = vector.load %arg2[%c0_1, %c0_2] : memref<32x128xf32, #tpu.memory_space<vmem>>, vector<32x128xf32>
    %c0_3 = arith.constant 0 : index
    %c0_4 = arith.constant 0 : index
    %2 = vector.load %arg3[%c0_3, %c0_4] : memref<1x128xf32, #tpu.memory_space<vmem>>, vector<1x128xf32>
    %c0_5 = arith.constant 0 : index
    %c0_6 = arith.constant 0 : index
    %c0_7 = arith.constant 0 : index
    %3 = vector.load %arg0[%c0_5, %c0_6, %c0_7] : memref<8x2x16xf32, #tpu.memory_space<vmem>>, vector<8x2x16xf32>
    %4 = vector.shape_cast %3 : vector<8x2x16xf32> to vector<16x16xf32>
    %cst = arith.constant dense<0.000000e+00> : vector<16x128xf32>
    %5 = tpu.matmul %4, %0, %cst {dimension_numbers = #tpu.dot_dimension_numbers<[1], [0], [0], [1], [0, 0, 1, 1], [], []>} : vector<16x16xf32>, vector<16x128xf32>, vector<16x128xf32> -> vector<16x128xf32>
    %6 = vector.broadcast %2 : vector<1x128xf32> to vector<16x128xf32>
    %7 = arith.addf %5, %6 : vector<16x128xf32>
    %8 = vector.shape_cast %7 : vector<16x128xf32> to vector<8x2x128xf32>
    %c0_8 = arith.constant 0 : index
    %c0_9 = arith.constant 0 : index
    %c0_10 = arith.constant 0 : index
    %9 = vector.load %arg9[%c0_8, %c0_9, %c0_10] : memref<8x2x128xf32, #tpu.memory_space<vmem>>, vector<8x2x128xf32>
    tpu.vector_store %arg9[%c0_8, %c0_9, %c0_10], %8 {strides = array<i32>} : memref<8x2x128xf32, #tpu.memory_space<vmem>>, vector<8x2x128xf32>,
    %cst_11 = arith.constant 0.000000e+00 : f32
    %10 = vector.broadcast %cst_11 : f32 to vector<2x32xf32>
    %c0_i32 = arith.constant 0 : i32
    %11 = arith.index_cast %c0_i32 : i32 to index
    %c0_12 = arith.constant 0 : index
    %c0_13 = arith.constant 0 : index
    %12 = vector.load %arg9[%11, %c0_12, %c0_13] : memref<8x2x128xf32, #tpu.memory_space<vmem>>, vector<1x2x128xf32>
    %13 = vector.shape_cast %12 : vector<1x2x128xf32> to vector<2x128xf32>
    %cst_14 = arith.constant dense<0.000000e+00> : vector<2x128xf32>
    %14 = tpu.matmul %10, %1, %cst_14 {dimension_numbers = #tpu.dot_dimension_numbers<[1], [0], [0], [1], [0, 0, 1, 1], [], []>} : vector<2x32xf32>, vector<32x128xf32>, vector<2x128xf32> -> vector<2x128xf32>
    %15 = arith.addf %13, %14 : vector<2x128xf32>
    %16 = arith.negf %15 : vector<2x128xf32>
    %17 = math.exp %16 : vector<2x128xf32>
    %cst_15 = arith.constant 1.000000e+00 : f32
    %18 = vector.broadcast %cst_15 : f32 to vector<2x128xf32>
    %19 = arith.addf %18, %17 : vector<2x128xf32>
    %20 = arith.divf %18, %19 : vector<2x128xf32>
    %21 = math.tanh %15 : vector<2x128xf32>
    %22 = vector.extract_strided_slice %20 {offsets = [0, 0], sizes = [2, 32], strides = [1, 1]} : vector<2x128xf32> to vector<2x32xf32>
    %23 = vector.extract_strided_slice %20 {offsets = [0, 32], sizes = [2, 32], strides = [1, 1]} : vector<2x128xf32> to vector<2x32xf32>
    %24 = vector.extract_strided_slice %21 {offsets = [0, 64], sizes = [2, 32], strides = [1, 1]} : vector<2x128xf32> to vector<2x32xf32>
    %25 = vector.extract_strided_slice %20 {offsets = [0, 96], sizes = [2, 32], strides = [1, 1]} : vector<2x128xf32> to vector<2x32xf32>
    %26 = arith.mulf %23, %10 : vector<2x32xf32>
    %27 = arith.mulf %22, %24 : vector<2x32xf32>
    %28 = arith.addf %26, %27 : vector<2x32xf32>
    %29 = math.tanh %28 : vector<2x32xf32>
    %30 = arith.mulf %25, %29 : vector<2x32xf32>
    %c1_i32 = arith.constant 1 : i32
    %31 = arith.index_cast %c1_i32 : i32 to index
    %c0_16 = arith.constant 0 : index
    %c0_17 = arith.constant 0 : index
    %32 = vector.load %arg9[%31, %c0_16, %c0_17] : memref<8x2x128xf32, #tpu.memory_space<vmem>>, vector<1x2x128xf32>
    %33 = vector.shape_cast %32 : vector<1x2x128xf32> to vector<2x128xf32>
    %cst_18 = arith.constant dense<0.000000e+00> : vector<2x128xf32>
    %34 = tpu.matmul %30, %1, %cst_18 {dimension_numbers = #tpu.dot_dimension_numbers<[1], [0], [0], [1], [0, 0, 1, 1], [], []>} : vector<2x32xf32>, vector<32x128xf32>, vector<2x128xf32> -> vector<2x128xf32>
    %35 = arith.addf %33, %34 : vector<2x128xf32>
    %36 = arith.negf %35 : vector<2x128xf32>
    %37 = math.exp %36 : vector<2x128xf32>
    %cst_19 = arith.constant 1.000000e+00 : f32
    %38 = vector.broadcast %cst_19 : f32 to vector<2x128xf32>
    %39 = arith.addf %38, %37 : vector<2x128xf32>
    %40 = arith.divf %38, %39 : vector<2x128xf32>
    %41 = math.tanh %35 : vector<2x128xf32>
    %42 = vector.extract_strided_slice %40 {offsets = [0, 0], sizes = [2, 32], strides = [1, 1]} : vector<2x128xf32> to vector<2x32xf32>
    %43 = vector.extract_strided_slice %40 {offsets = [0, 32], sizes = [2, 32], strides = [1, 1]} : vector<2x128xf32> to vector<2x32xf32>
    %44 = vector.extract_strided_slice %41 {offsets = [0, 64], sizes = [2, 32], strides = [1, 1]} : vector<2x128xf32> to vector<2x32xf32>
    %45 = vector.extract_strided_slice %40 {offsets = [0, 96], sizes = [2, 32], strides = [1, 1]} : vector<2x128xf32> to vector<2x32xf32>
    %46 = arith.mulf %43, %28 : vector<2x32xf32>
    %47 = arith.mulf %42, %44 : vector<2x32xf32>
    %48 = arith.addf %46, %47 : vector<2x32xf32>
    %49 = math.tanh %48 : vector<2x32xf32>
    %50 = arith.mulf %45, %49 : vector<2x32xf32>
    %c2_i32 = arith.constant 2 : i32
    %51 = arith.index_cast %c2_i32 : i32 to index
    %c0_20 = arith.constant 0 : index
    %c0_21 = arith.constant 0 : index
    %52 = vector.load %arg9[%51, %c0_20, %c0_21] : memref<8x2x128xf32, #tpu.memory_space<vmem>>, vector<1x2x128xf32>
    %53 = vector.shape_cast %52 : vector<1x2x128xf32> to vector<2x128xf32>
    %cst_22 = arith.constant dense<0.000000e+00> : vector<2x128xf32>
    %54 = tpu.matmul %50, %1, %cst_22 {dimension_numbers = #tpu.dot_dimension_numbers<[1], [0], [0], [1], [0, 0, 1, 1], [], []>} : vector<2x32xf32>, vector<32x128xf32>, vector<2x128xf32> -> vector<2x128xf32>
    %55 = arith.addf %53, %54 : vector<2x128xf32>
    %56 = arith.negf %55 : vector<2x128xf32>
    %57 = math.exp %56 : vector<2x128xf32>
    %cst_23 = arith.constant 1.000000e+00 : f32
    %58 = vector.broadcast %cst_23 : f32 to vector<2x128xf32>
    %59 = arith.addf %58, %57 : vector<2x128xf32>
    %60 = arith.divf %58, %59 : vector<2x128xf32>
    %61 = math.tanh %55 : vector<2x128xf32>
    %62 = vector.extract_strided_slice %60 {offsets = [0, 0], sizes = [2, 32], strides = [1, 1]} : vector<2x128xf32> to vector<2x32xf32>
    %63 = vector.extract_strided_slice %60 {offsets = [0, 32], sizes = [2, 32], strides = [1, 1]} : vector<2x128xf32> to vector<2x32xf32>
    %64 = vector.extract_strided_slice %61 {offsets = [0, 64], sizes = [2, 32], strides = [1, 1]} : vector<2x128xf32> to vector<2x32xf32>
    %65 = vector.extract_strided_slice %60 {offsets = [0, 96], sizes = [2, 32], strides = [1, 1]} : vector<2x128xf32> to vector<2x32xf32>
    %66 = arith.mulf %63, %48 : vector<2x32xf32>
    %67 = arith.mulf %62, %64 : vector<2x32xf32>
    %68 = arith.addf %66, %67 : vector<2x32xf32>
    %69 = math.tanh %68 : vector<2x32xf32>
    %70 = arith.mulf %65, %69 : vector<2x32xf32>
    %c3_i32 = arith.constant 3 : i32
    %71 = arith.index_cast %c3_i32 : i32 to index
    %c0_24 = arith.constant 0 : index
    %c0_25 = arith.constant 0 : index
    %72 = vector.load %arg9[%71, %c0_24, %c0_25] : memref<8x2x128xf32, #tpu.memory_space<vmem>>, vector<1x2x128xf32>
    %73 = vector.shape_cast %72 : vector<1x2x128xf32> to vector<2x128xf32>
    %cst_26 = arith.constant dense<0.000000e+00> : vector<2x128xf32>
    %74 = tpu.matmul %70, %1, %cst_26 {dimension_numbers = #tpu.dot_dimension_numbers<[1], [0], [0], [1], [0, 0, 1, 1], [], []>} : vector<2x32xf32>, vector<32x128xf32>, vector<2x128xf32> -> vector<2x128xf32>
    %75 = arith.addf %73, %74 : vector<2x128xf32>
    %76 = arith.negf %75 : vector<2x128xf32>
    %77 = math.exp %76 : vector<2x128xf32>
    %cst_27 = arith.constant 1.000000e+00 : f32
    %78 = vector.broadcast %cst_27 : f32 to vector<2x128xf32>
    %79 = arith.addf %78, %77 : vector<2x128xf32>
    %80 = arith.divf %78, %79 : vector<2x128xf32>
    %81 = math.tanh %75 : vector<2x128xf32>
    %82 = vector.extract_strided_slice %80 {offsets = [0, 0], sizes = [2, 32], strides = [1, 1]} : vector<2x128xf32> to vector<2x32xf32>
    %83 = vector.extract_strided_slice %80 {offsets = [0, 32], sizes = [2, 32], strides = [1, 1]} : vector<2x128xf32> to vector<2x32xf32>
    %84 = vector.extract_strided_slice %81 {offsets = [0, 64], sizes = [2, 32], strides = [1, 1]} : vector<2x128xf32> to vector<2x32xf32>
    %85 = vector.extract_strided_slice %80 {offsets = [0, 96], sizes = [2, 32], strides = [1, 1]} : vector<2x128xf32> to vector<2x32xf32>
    %86 = arith.mulf %83, %68 : vector<2x32xf32>
    %87 = arith.mulf %82, %84 : vector<2x32xf32>
    %88 = arith.addf %86, %87 : vector<2x32xf32>
    %89 = math.tanh %88 : vector<2x32xf32>
    %90 = arith.mulf %85, %89 : vector<2x32xf32>
    %c4_i32 = arith.constant 4 : i32
    %91 = arith.index_cast %c4_i32 : i32 to index
    %c0_28 = arith.constant 0 : index
    %c0_29 = arith.constant 0 : index
    %92 = vector.load %arg9[%91, %c0_28, %c0_29] : memref<8x2x128xf32, #tpu.memory_space<vmem>>, vector<1x2x128xf32>
    %93 = vector.shape_cast %92 : vector<1x2x128xf32> to vector<2x128xf32>
    %cst_30 = arith.constant dense<0.000000e+00> : vector<2x128xf32>
    %94 = tpu.matmul %90, %1, %cst_30 {dimension_numbers = #tpu.dot_dimension_numbers<[1], [0], [0], [1], [0, 0, 1, 1], [], []>} : vector<2x32xf32>, vector<32x128xf32>, vector<2x128xf32> -> vector<2x128xf32>
    %95 = arith.addf %93, %94 : vector<2x128xf32>
    %96 = arith.negf %95 : vector<2x128xf32>
    %97 = math.exp %96 : vector<2x128xf32>
    %cst_31 = arith.constant 1.000000e+00 : f32
    %98 = vector.broadcast %cst_31 : f32 to vector<2x128xf32>
    %99 = arith.addf %98, %97 : vector<2x128xf32>
    %100 = arith.divf %98, %99 : vector<2x128xf32>
    %101 = math.tanh %95 : vector<2x128xf32>
    %102 = vector.extract_strided_slice %100 {offsets = [0, 0], sizes = [2, 32], strides = [1, 1]} : vector<2x128xf32> to vector<2x32xf32>
    %103 = vector.extract_strided_slice %100 {offsets = [0, 32], sizes = [2, 32], strides = [1, 1]} : vector<2x128xf32> to vector<2x32xf32>
    %104 = vector.extract_strided_slice %101 {offsets = [0, 64], sizes = [2, 32], strides = [1, 1]} : vector<2x128xf32> to vector<2x32xf32>
    %105 = vector.extract_strided_slice %100 {offsets = [0, 96], sizes = [2, 32], strides = [1, 1]} : vector<2x128xf32> to vector<2x32xf32>
    %106 = arith.mulf %103, %88 : vector<2x32xf32>
    %107 = arith.mulf %102, %104 : vector<2x32xf32>
    %108 = arith.addf %106, %107 : vector<2x32xf32>
    %109 = math.tanh %108 : vector<2x32xf32>
    %110 = arith.mulf %105, %109 : vector<2x32xf32>
    %c5_i32 = arith.constant 5 : i32
    %111 = arith.index_cast %c5_i32 : i32 to index
    %c0_32 = arith.constant 0 : index
    %c0_33 = arith.constant 0 : index
    %112 = vector.load %arg9[%111, %c0_32, %c0_33] : memref<8x2x128xf32, #tpu.memory_space<vmem>>, vector<1x2x128xf32>
    %113 = vector.shape_cast %112 : vector<1x2x128xf32> to vector<2x128xf32>
    %cst_34 = arith.constant dense<0.000000e+00> : vector<2x128xf32>
    %114 = tpu.matmul %110, %1, %cst_34 {dimension_numbers = #tpu.dot_dimension_numbers<[1], [0], [0], [1], [0, 0, 1, 1], [], []>} : vector<2x32xf32>, vector<32x128xf32>, vector<2x128xf32> -> vector<2x128xf32>
    %115 = arith.addf %113, %114 : vector<2x128xf32>
    %116 = arith.negf %115 : vector<2x128xf32>
    %117 = math.exp %116 : vector<2x128xf32>
    %cst_35 = arith.constant 1.000000e+00 : f32
    %118 = vector.broadcast %cst_35 : f32 to vector<2x128xf32>
    %119 = arith.addf %118, %117 : vector<2x128xf32>
    %120 = arith.divf %118, %119 : vector<2x128xf32>
    %121 = math.tanh %115 : vector<2x128xf32>
    %122 = vector.extract_strided_slice %120 {offsets = [0, 0], sizes = [2, 32], strides = [1, 1]} : vector<2x128xf32> to vector<2x32xf32>
    %123 = vector.extract_strided_slice %120 {offsets = [0, 32], sizes = [2, 32], strides = [1, 1]} : vector<2x128xf32> to vector<2x32xf32>
    %124 = vector.extract_strided_slice %121 {offsets = [0, 64], sizes = [2, 32], strides = [1, 1]} : vector<2x128xf32> to vector<2x32xf32>
    %125 = vector.extract_strided_slice %120 {offsets = [0, 96], sizes = [2, 32], strides = [1, 1]} : vector<2x128xf32> to vector<2x32xf32>
    %126 = arith.mulf %123, %108 : vector<2x32xf32>
    %127 = arith.mulf %122, %124 : vector<2x32xf32>
    %128 = arith.addf %126, %127 : vector<2x32xf32>
    %129 = math.tanh %128 : vector<2x32xf32>
    %130 = arith.mulf %125, %129 : vector<2x32xf32>
    %c6_i32 = arith.constant 6 : i32
    %131 = arith.index_cast %c6_i32 : i32 to index
    %c0_36 = arith.constant 0 : index
    %c0_37 = arith.constant 0 : index
    %132 = vector.load %arg9[%131, %c0_36, %c0_37] : memref<8x2x128xf32, #tpu.memory_space<vmem>>, vector<1x2x128xf32>
    %133 = vector.shape_cast %132 : vector<1x2x128xf32> to vector<2x128xf32>
    %cst_38 = arith.constant dense<0.000000e+00> : vector<2x128xf32>
    %134 = tpu.matmul %130, %1, %cst_38 {dimension_numbers = #tpu.dot_dimension_numbers<[1], [0], [0], [1], [0, 0, 1, 1], [], []>} : vector<2x32xf32>, vector<32x128xf32>, vector<2x128xf32> -> vector<2x128xf32>
    %135 = arith.addf %133, %134 : vector<2x128xf32>
    %136 = arith.negf %135 : vector<2x128xf32>
    %137 = math.exp %136 : vector<2x128xf32>
    %cst_39 = arith.constant 1.000000e+00 : f32
    %138 = vector.broadcast %cst_39 : f32 to vector<2x128xf32>
    %139 = arith.addf %138, %137 : vector<2x128xf32>
    %140 = arith.divf %138, %139 : vector<2x128xf32>
    %141 = math.tanh %135 : vector<2x128xf32>
    %142 = vector.extract_strided_slice %140 {offsets = [0, 0], sizes = [2, 32], strides = [1, 1]} : vector<2x128xf32> to vector<2x32xf32>
    %143 = vector.extract_strided_slice %140 {offsets = [0, 32], sizes = [2, 32], strides = [1, 1]} : vector<2x128xf32> to vector<2x32xf32>
    %144 = vector.extract_strided_slice %141 {offsets = [0, 64], sizes = [2, 32], strides = [1, 1]} : vector<2x128xf32> to vector<2x32xf32>
    %145 = vector.extract_strided_slice %140 {offsets = [0, 96], sizes = [2, 32], strides = [1, 1]} : vector<2x128xf32> to vector<2x32xf32>
    %146 = arith.mulf %143, %128 : vector<2x32xf32>
    %147 = arith.mulf %142, %144 : vector<2x32xf32>
    %148 = arith.addf %146, %147 : vector<2x32xf32>
    %149 = math.tanh %148 : vector<2x32xf32>
    %150 = arith.mulf %145, %149 : vector<2x32xf32>
    %c7_i32 = arith.constant 7 : i32
    %151 = arith.index_cast %c7_i32 : i32 to index
    %c0_40 = arith.constant 0 : index
    %c0_41 = arith.constant 0 : index
    %152 = vector.load %arg9[%151, %c0_40, %c0_41] : memref<8x2x128xf32, #tpu.memory_space<vmem>>, vector<1x2x128xf32>
    %153 = vector.shape_cast %152 : vector<1x2x128xf32> to vector<2x128xf32>
    %cst_42 = arith.constant dense<0.000000e+00> : vector<2x128xf32>
    %154 = tpu.matmul %150, %1, %cst_42 {dimension_numbers = #tpu.dot_dimension_numbers<[1], [0], [0], [1], [0, 0, 1, 1], [], []>} : vector<2x32xf32>, vector<32x128xf32>, vector<2x128xf32> -> vector<2x128xf32>
    %155 = arith.addf %153, %154 : vector<2x128xf32>
    %156 = arith.negf %155 : vector<2x128xf32>
    %157 = math.exp %156 : vector<2x128xf32>
    %cst_43 = arith.constant 1.000000e+00 : f32
    %158 = vector.broadcast %cst_43 : f32 to vector<2x128xf32>
    %159 = arith.addf %158, %157 : vector<2x128xf32>
    %160 = arith.divf %158, %159 : vector<2x128xf32>
    %161 = math.tanh %155 : vector<2x128xf32>
    %162 = vector.extract_strided_slice %160 {offsets = [0, 0], sizes = [2, 32], strides = [1, 1]} : vector<2x128xf32> to vector<2x32xf32>
    %163 = vector.extract_strided_slice %160 {offsets = [0, 32], sizes = [2, 32], strides = [1, 1]} : vector<2x128xf32> to vector<2x32xf32>
    %164 = vector.extract_strided_slice %161 {offsets = [0, 64], sizes = [2, 32], strides = [1, 1]} : vector<2x128xf32> to vector<2x32xf32>
    %165 = vector.extract_strided_slice %160 {offsets = [0, 96], sizes = [2, 32], strides = [1, 1]} : vector<2x128xf32> to vector<2x32xf32>
    %166 = arith.mulf %163, %148 : vector<2x32xf32>
    %167 = arith.mulf %162, %164 : vector<2x32xf32>
    %168 = arith.addf %166, %167 : vector<2x32xf32>
    %169 = math.tanh %168 : vector<2x32xf32>
    %170 = arith.mulf %165, %169 : vector<2x32xf32>
    %c8_i32 = arith.constant 8 : i32
    %cst_44 = arith.constant 0.000000e+00 : f32
    %171 = vector.broadcast %cst_44 : f32 to vector<2x32xf32>
    %172 = arith.maximumf %170, %171 : vector<2x32xf32>
    %c0_45 = arith.constant 0 : index
    %c0_46 = arith.constant 0 : index
    %173 = vector.load %arg4[%c0_45, %c0_46] : memref<32x128xf32, #tpu.memory_space<vmem>>, vector<32x128xf32>
    %cst_47 = arith.constant dense<0.000000e+00> : vector<2x128xf32>
    %174 = tpu.matmul %172, %173, %cst_47 {dimension_numbers = #tpu.dot_dimension_numbers<[1], [0], [0], [1], [0, 0, 1, 1], [], []>} : vector<2x32xf32>, vector<32x128xf32>, vector<2x128xf32> -> vector<2x128xf32>
    %c0_48 = arith.constant 0 : index
    %c0_49 = arith.constant 0 : index
    %175 = vector.load %arg5[%c0_48, %c0_49] : memref<1x128xf32, #tpu.memory_space<vmem>>, vector<1x128xf32>
    %176 = vector.broadcast %175 : vector<1x128xf32> to vector<2x128xf32>
    %177 = arith.addf %174, %176 : vector<2x128xf32>
    %cst_50 = arith.constant 0.000000e+00 : f32
    %178 = vector.broadcast %cst_50 : f32 to vector<2x128xf32>
    %179 = arith.maximumf %177, %178 : vector<2x128xf32>
    %c0_51 = arith.constant 0 : index
    %c0_52 = arith.constant 0 : index
    %180 = vector.load %arg6[%c0_51, %c0_52] : memref<128x128xf32, #tpu.memory_space<vmem>>, vector<128x128xf32>
    %cst_53 = arith.constant dense<0.000000e+00> : vector<2x128xf32>
    %181 = tpu.matmul %179, %180, %cst_53 {dimension_numbers = #tpu.dot_dimension_numbers<[1], [0], [0], [1], [0, 0, 1, 1], [], []>} : vector<2x128xf32>, vector<128x128xf32>, vector<2x128xf32> -> vector<2x128xf32>
    %c0_54 = arith.constant 0 : index
    %c0_55 = arith.constant 0 : index
    %182 = vector.load %arg7[%c0_54, %c0_55] : memref<1x128xf32, #tpu.memory_space<vmem>>, vector<1x128xf32>
    %183 = vector.broadcast %182 : vector<1x128xf32> to vector<2x128xf32>
    %184 = arith.addf %181, %183 : vector<2x128xf32>
    %c0_56 = arith.constant 0 : index
    %c0_57 = arith.constant 0 : index
    %185 = vector.load %arg8[%c0_56, %c0_57] : memref<2x128xf32, #tpu.memory_space<vmem>>, vector<2x128xf32>
    tpu.vector_store %arg8[%c0_56, %c0_57], %184 {strides = array<i32>} : memref<2x128xf32, #tpu.memory_space<vmem>>, vector<2x128xf32>,
    return
  }
}

</mosaic_0001>

<bundles_post_ra>
// kernel: water_lstm_forward.1
= control target key start
LH: loop header
LB: loop body
LE: loop exit
PB: predicated region body
PF: predicated region fallthrough
CT: control target
= control target key end

     0   :  { %v63_v0 = vlaneseq  ;;  %v1608_v4 = vmov 1983009808   ;;  %v1609_v6 = vmov 0.0|0.0   ;;  %vm1610_vm0 = vmmov 0   ;;  %s1613_s10 = smov 32   ;;  %s1880_s1 = inlined_call_operand.vmem [shape: f32[16,128], index: 1, kind: input, shape index: {}]   ;;  %s1881_s0 = inlined_call_operand.vmem [shape: f32[8,2,16], index: 0, kind: input, shape index: {}]   ;;  %s1882_s2 = inlined_call_operand.vmem [shape: f32[32,128], index: 2, kind: input, shape index: {}]   ;;  %s1883_s3 = inlined_call_operand.vmem [shape: f32[1,128], index: 3, kind: input, shape index: {}]   ;;  %s1884_s4 = inlined_call_operand.vmem [shape: f32[32,128], index: 4, kind: input, shape index: {}]   ;;  %s1885_s6 = inlined_call_operand.vmem [shape: f32[128,128], index: 6, kind: input, shape index: {}]   ;;  %s1886_s5 = inlined_call_operand.vmem [shape: f32[1,128], index: 5, kind: input, shape index: {}]   ;;  %s1887_s7 = inlined_call_operand.vmem [shape: f32[1,128], index: 7, kind: input, shape index: {}]   ;;  %s1888_s8 = inlined_call_operand.vmem [shape: f32[2,128], index: 8, kind: output, shape index: {}]  }
   0x1   :  { %v29_v1 = vld [vmem:[%s1880_s1] sm:$0xff]  ;;  %v30_v2 = vld [vmem:[%s1880_s1 + $0x8] sm:$0xff]  ;;  %v61_v5 = vunpack.c.l.s4 %v1608_v4  ;;  %1478 = vmatprep.subr.bf16.mxu0 %v1609_v6  ;;  %v1611_v11 = vmov 0.0   ;;  %v33_v26 = vld [vmem:[%s1882_s2 + $0x10] sm:$0xff]  ;;  %vm92_vm1 = vcmask 130048   ;;  %vm225_vm2 = vcmask 261120  }
   0x2   :  { %v36_v3 = vld [vmem:[%s1881_s0] sm:$0x3]  ;;  %v1456_v7 = vpack.c.bf16 %v30_v2, %v29_v1  ;;  %v37_v8 = vld [vmem:[%s1881_s0 + $0x2] sm:$0x3]  ;;  %v38_v9 = vld [vmem:[%s1881_s0 + $0x4] sm:$0x3]  ;;  %1363 = vmatprep.mubr.msk.f32.mxu0 %vm1610_vm0, %v1611_v11 }
   0x3   :  { %v39_v10 = vld [vmem:[%s1881_s0 + $0x6] sm:$0x3]  ;;  %v58_v12 = vcombine.low %v36_v3, %v37_v8  ;;  %v62_v14 = vunpack.c.0.s8 %v61_v5  ;;  %v64_v15 = vshrl.u32 %v63_v0, 7  ;;  %v40_v16 = vld [vmem:[%s1881_s0 + $0x8] sm:$0x3]  ;;  %v34_v27 = vld [vmem:[%s1882_s2 + $0x18] sm:$0xff] }
   0x4   :  { %v59_v13 = vcombine.low %v38_v9, %v39_v10  ;;  %v41_v17 = vld [vmem:[%s1881_s0 + $0xa] sm:$0x3]  ;;  %v31_v18 = vld [vmem:[%s1882_s2] sm:$0xff]  ;;  %1457 = vmatprep.subr.bf16.mxu1 %v1456_v7  ;;  %v42_v19 = vld [vmem:[%s1881_s0 + $0xc] sm:$0x3]  ;;  %v1709_v34 = vpack.c.bf16 %v34_v27, %v33_v26 }
   0x5   :  { %v43_v20 = vld [vmem:[%s1881_s0 + $0xe] sm:$0x3]  ;;  %v75_v21 = vcombine.low %v40_v16, %v41_v17  ;;  %1459 = vmatpush3.bf16.msra.mxu1 %v1456_v7  ;;  %v65_v23 = vsub.s32 %v62_v14, %v64_v15  ;;  %v1224_v35 = vld [vmem:[%s1883_s3] ss:$0 sm:$0xff]  ;;  %s1612_s3 = smov 64  }
   0x6   :  { %v32_v22 = vld [vmem:[%s1882_s2 + $0x8] sm:$0xff]  ;;  %v76_v24 = vcombine.low %v42_v19, %v43_v20  ;;  %1460 = vmatprep.subr.bf16.mxu1 %v1609_v6 }
   0x7   :  { %v1698_v25 = vpack.c.bf16 %v32_v22, %v31_v18  ;;  %v66_v28 = vrot.slane %v58_v12, %v65_v23  ;;  %v73_v29 = vrot.slane %v59_v13, %v65_v23  ;;  %v83_v30 = vrot.slane %v75_v21, %v65_v23 }
   0x8   :  { %v90_v31 = vrot.slane %v76_v24, %v65_v23 }
   0x9   :  { %1480 = vmatpush3.bf16.msra.mxu0 %v1698_v25  ;;  %v74_v32 = vcombine.low %v66_v28, %v73_v29 }
   0xa   :  { %1481 = vmatprep.subr.bf16.mxu0 %v1609_v6  ;;  %v91_v33 = vcombine.low %v83_v30, %v90_v31 }
   0xb   :  { %1319 = vmatprep.mubr.msk.f32.mxu1 %vm92_vm1, %v74_v32 }
   0xc   :  { %1320 = vmatmul.mubr.msk.f32.vlgmr.msra.gmra.mrb[0].mxu1 %vm92_vm1, %v91_v33 }
   0xd   :  { %1483 = vmatpush3.bf16.msra.mxu0 %v1709_v34  ;;  %1462 = vmatpush3.bf16.msra.mxu1 %v1698_v25 }
   0xe   :  { %1490 = vmatprep.subr.bf16.mxu0 %v1609_v6  ;;  %1330 = vmatprep.mubr.msk.f32.mxu1 %vm1610_vm0, %v1611_v11 }
   0xf   :  { %1463 = vmatprep.subr.bf16.mxu1 %v1609_v6 }
  0x11   :  { %1465 = vmatpush3.bf16.msra.mxu1 %v1709_v34 }
  0x12   :  { %1466 = vmatprep.subr.bf16.mxu1 %v1609_v6 }
  0x14   :  { %1331 = vmatmul.mubr.f32.vlgmr.msra.gmra.mrb[2].mxu1 %v1611_v11 }
  0x15   :  { %1468 = vmatpush3.bf16.msra.mxu1 %v1698_v25  ;;  %1341 = vmatprep.mubr.msk.f32.mxu1 %vm1610_vm0, %v1611_v11 }
  0x16   :  { %1469 = vmatprep.subr.bf16.mxu1 %v1609_v6 }
  0x19   :  { %1471 = vmatpush3.bf16.msra.mxu1 %v1709_v34 }
  0x1a   :  { %1472 = vmatprep.subr.bf16.mxu1 %v1609_v6 }
  0xdf   :  { %v1321_v36 = vpop.f32.mrb[0].mxu1 }
  0xe0   :  { %v169_v37 = vadd.f32 %v1321_v36, %v1224_v35  ;;  %v163_v38 = vpop.f32.mrb[1].mxu1 }
  0xe1   :  { %v164_v39 = vadd.f32 %v1224_v35, %v163_v38 }
  0xe2   :  { %v191_v40 = vcombine.high %v169_v37, %v169_v37  ;;  %v198_v41 = vrot.slane %v169_v37, %v65_v23  ;;  %1229 = vst.sshfl [vmem:[#allocation2 + $0x8] sm:$0x3 pattern:$0x76325410] %v169_v37 }
  0xe3   :  { %v174_v42 = vcombine.high %v164_v39, %v164_v39  ;;  %v181_v43 = vrot.slane %v164_v39, %v65_v23  ;;  %1227 = vst.sshfl [vmem:[#allocation2] sm:$0x3 pattern:$0x76325410] %v164_v39 }
  0xe4   :  { %v205_v44 = vrot.slane %v191_v40, %v65_v23  ;;  %v206_v45 = vcombine.high %v198_v41, %v198_v41  ;;  %1230 = vst.sshfl [vmem:[#allocation2 + $0xc] sm:$0x3 pattern:$0x76325410] %v191_v40 }
  0xe5   :  { %v188_v46 = vrot.slane %v174_v42, %v65_v23  ;;  %v189_v47 = vcombine.high %v181_v43, %v181_v43  ;;  %1228 = vst.sshfl [vmem:[#allocation2 + $0x4] sm:$0x3 pattern:$0x76325410] %v174_v42 }
  0xe6   :  { %v207_v48 = vcombine.high %v205_v44, %v205_v44  ;;  %221 = vst [vmem:[#allocation2 + $0xa] sm:$0x3] %v206_v45 }
  0xe7   :  { %v190_v49 = vcombine.high %v188_v46, %v188_v46  ;;  %217 = vst [vmem:[#allocation2 + $0x2] sm:$0x3] %v189_v47  ;;  %v295_v50 = vpop.f32.mrb[2].mxu1 }
  0xe8   :  { %223 = vst [vmem:[#allocation2 + $0xe] sm:$0x3] %v207_v48  ;;  %v1332_v51 = vpop.f32.mrb[3].mxu1 }
  0xe9   :  { %219 = vst [vmem:[#allocation2 + $0x6] sm:$0x3] %v190_v49 }
  0xea   :  { %v224_v52 = vld [vmem:[#allocation2] sm:$0x3] }
  0xeb   :  { %v299_v53 = vadd.f32 %v295_v50, %v224_v52 }
  0xec   :  { %v427_v24 = vld [vmem:[#allocation2 + $0x4] sm:$0x3] }
  0xed   :  { %1544 = vtanh.f32 %v299_v53  ;;  %v1231_v55 = vmul.f32 -1.442695, %v299_v53 }
  0xee   :  { %v325_v4 = vld [vmem:[#allocation2 + $0x2] sm:$0x3] }
  0xef   :  { %1546 = vpow2.f32 %v1231_v55 }
  0xf0   :  { %v529_v44 = vld [vmem:[#allocation2 + $0x6] sm:$0x3] }
  0xf7   :  { %v1545_v54 = vpop.eup %1544 }
  0xf8   :  { %309 = vrot.lane.b32.xlu0 %v1545_v54, %s1612_s3 }
  0xf9   :  { %v1547_v56 = vpop.eup %1546 }
  0xfa   :  { %v303_v57 = vadd.f32 1.0, %v1547_v56 }
  0xfc   :  { %1548 = vrcp.f32 %v303_v57 }
 0x106   :  { %v1549_v58 = vpop.eup %1548 }
 0x107   :  { %v307_v61 = vmul.f32 0.0, %v1549_v58 }
 0x16a   :  { %v310_v59 = vpop.permute.xlu0 %309 }
 0x16b   :  { %v312_v60 = vmul.f32 %v1549_v58, %v310_v59 }
 0x16d   :  { %314 = vrot.lane.b32.xlu0 %v312_v60, %s1613_s10 }
 0x1df   :  { %v315_v62 = vpop.permute.xlu0 %314 }
 0x1e0   :  { %v317_v63 = vadd.f32 %v315_v62, %v307_v61  ;;  %v631_v62 = vld [vmem:[#allocation2 + $0x8] sm:$0x3] }
 0x1e2   :  { %1550 = vtanh.f32 %v317_v63 }
 0x1ec   :  { %v1551_v0 = vpop.eup %1550 }
 0x1ed   :  { %320 = vrot.lane.b32.xlu1 %v1551_v0, %s1612_s3 }
 0x25f   :  { %v321_v1 = vpop.permute.xlu1 %320 }
 0x260   :  { %v323_v2 = vmul.f32 %v1549_v58, %v321_v1 }
 0x262   :  { %327 = vrot.lane.b32.xlu1 %v323_v2, %s1613_s10 }
 0x2d4   :  { %v328_v3 = vpop.permute.xlu1 %327 }
 0x2d5   :  { %1342 = vmatmul.mubr.msk.f32.vlgmr.msra.gmra.mrb[4].mxu1 %vm225_vm2, %v328_v3 }
 0x2d6   :  { %1474 = vmatpush3.bf16.msra.mxu1 %v1698_v25  ;;  %1352 = vmatprep.mubr.msk.f32.mxu1 %vm1610_vm0, %v1611_v11 }
 0x2d7   :  { %1475 = vmatprep.subr.bf16.mxu1 %v1609_v6 }
 0x2da   :  { %1477 = vmatpush3.bf16.msra.mxu1 %v1709_v34 }
 0x2db   :  { %1484 = vmatprep.subr.bf16.mxu1 %v1609_v6 }
 0x3a8   :  { %v397_v5 = vpop.f32.mrb[4].mxu1 }
 0x3a9   :  { %v401_v7 = vadd.f32 %v397_v5, %v325_v4  ;;  %v1343_v8 = vpop.f32.mrb[5].mxu1 }
 0x3ab   :  { %1552 = vtanh.f32 %v401_v7  ;;  %v1233_v10 = vmul.f32 -1.442695, %v401_v7 }
 0x3ad   :  { %1554 = vpow2.f32 %v1233_v10 }
 0x3b5   :  { %v1553_v9 = vpop.eup %1552 }
 0x3b6   :  { %411 = vrot.lane.b32.xlu0 %v1553_v9, %s1612_s3 }
 0x3b7   :  { %v1555_v12 = vpop.eup %1554 }
 0x3b8   :  { %v405_v13 = vadd.f32 1.0, %v1555_v12 }
 0x3ba   :  { %1556 = vrcp.f32 %v405_v13 }
 0x3c4   :  { %v1557_v14 = vpop.eup %1556 }
 0x3c5   :  { %v409_v17 = vmul.f32 %v1557_v14, %v317_v63 }
 0x428   :  { %v412_v15 = vpop.permute.xlu0 %411 }
 0x429   :  { %v414_v16 = vmul.f32 %v1557_v14, %v412_v15 }
 0x42b   :  { %416 = vrot.lane.b32.xlu1 %v414_v16, %s1613_s10 }
 0x49d   :  { %v417_v18 = vpop.permute.xlu1 %416 }
 0x49e   :  { %v419_v19 = vadd.f32 %v417_v18, %v409_v17  ;;  %v733_v18 = vld [vmem:[#allocation2 + $0xa] sm:$0x3] }
 0x4a0   :  { %1558 = vtanh.f32 %v419_v19 }
 0x4aa   :  { %v1559_v20 = vpop.eup %1558 }
 0x4ab   :  { %422 = vrot.lane.b32.xlu0 %v1559_v20, %s1612_s3 }
 0x51d   :  { %v423_v21 = vpop.permute.xlu0 %422 }
 0x51e   :  { %v425_v22 = vmul.f32 %v1557_v14, %v423_v21 }
 0x520   :  { %429 = vrot.lane.b32.xlu1 %v425_v22, %s1613_s10 }
 0x592   :  { %v430_v23 = vpop.permute.xlu1 %429 }
 0x593   :  { %1353 = vmatmul.mubr.msk.f32.vlgmr.msra.gmra.mrb[6].mxu1 %vm225_vm2, %v430_v23 }
 0x594   :  { %1486 = vmatpush3.bf16.msra.mxu1 %v1698_v25  ;;  %1374 = vmatprep.mubr.msk.f32.mxu1 %vm1610_vm0, %v1611_v11 }
 0x595   :  { %1487 = vmatprep.subr.bf16.mxu1 %v1609_v6 }
 0x598   :  { %1489 = vmatpush3.bf16.msra.mxu1 %v1709_v34 }
 0x599   :  { %1496 = vmatprep.subr.bf16.mxu1 %v1609_v6 }
 0x666   :  { %v499_v26 = vpop.f32.mrb[6].mxu1 }
 0x667   :  { %v503_v27 = vadd.f32 %v499_v26, %v427_v24  ;;  %v1354_v28 = vpop.f32.mrb[7].mxu1 }
 0x669   :  { %1560 = vtanh.f32 %v503_v27  ;;  %v1235_v30 = vmul.f32 -1.442695, %v503_v27 }
 0x66b   :  { %1562 = vpow2.f32 %v1235_v30 }
 0x673   :  { %v1561_v29 = vpop.eup %1560 }
 0x674   :  { %513 = vrot.lane.b32.xlu0 %v1561_v29, %s1612_s3 }
 0x675   :  { %v1563_v31 = vpop.eup %1562 }
 0x676   :  { %v507_v32 = vadd.f32 1.0, %v1563_v31 }
 0x678   :  { %1564 = vrcp.f32 %v507_v32 }
 0x682   :  { %v1565_v33 = vpop.eup %1564 }
 0x683   :  { %v511_v37 = vmul.f32 %v1565_v33, %v419_v19 }
 0x6e6   :  { %v514_v35 = vpop.permute.xlu0 %513 }
 0x6e7   :  { %v516_v36 = vmul.f32 %v1565_v33, %v514_v35 }
 0x6e9   :  { %518 = vrot.lane.b32.xlu1 %v516_v36, %s1613_s10  ;;  %v835_v36 = vld [vmem:[#allocation2 + $0xc] sm:$0x3] }
 0x75b   :  { %v519_v38 = vpop.permute.xlu1 %518 }
 0x75c   :  { %v521_v39 = vadd.f32 %v519_v38, %v511_v37 }
 0x75e   :  { %1566 = vtanh.f32 %v521_v39 }
 0x768   :  { %v1567_v40 = vpop.eup %1566 }
 0x769   :  { %524 = vrot.lane.b32.xlu0 %v1567_v40, %s1612_s3 }
 0x7db   :  { %v525_v41 = vpop.permute.xlu0 %524 }
 0x7dc   :  { %v527_v42 = vmul.f32 %v1565_v33, %v525_v41 }
 0x7de   :  { %531 = vrot.lane.b32.xlu1 %v527_v42, %s1613_s10 }
 0x850   :  { %v532_v43 = vpop.permute.xlu1 %531 }
 0x851   :  { %1364 = vmatmul.mubr.msk.f32.vlgmr.msra.gmra.mrb[0].mxu0 %vm225_vm2, %v532_v43 }
 0x852   :  { %1492 = vmatpush3.bf16.msra.mxu0 %v1698_v25  ;;  %1385 = vmatprep.mubr.msk.f32.mxu0 %vm1610_vm0, %v1611_v11 }
 0x853   :  { %1493 = vmatprep.subr.bf16.mxu0 %v1609_v6 }
 0x856   :  { %1495 = vmatpush3.bf16.msra.mxu0 %v1709_v34 }
 0x857   :  { %1502 = vmatprep.subr.bf16.mxu0 %v1609_v6 }
 0x924   :  { %v601_v45 = vpop.f32.mrb[0].mxu0 }
 0x925   :  { %v605_v46 = vadd.f32 %v601_v45, %v529_v44  ;;  %v1365_v47 = vpop.f32.mrb[1].mxu0 }
 0x927   :  { %1568 = vtanh.f32 %v605_v46  ;;  %v1237_v49 = vmul.f32 -1.442695, %v605_v46 }
 0x929   :  { %1570 = vpow2.f32 %v1237_v49 }
 0x931   :  { %v1569_v48 = vpop.eup %1568 }
 0x932   :  { %615 = vrot.lane.b32.xlu0 %v1569_v48, %s1612_s3 }
 0x933   :  { %v1571_v50 = vpop.eup %1570 }
 0x934   :  { %v609_v51 = vadd.f32 1.0, %v1571_v50 }
 0x936   :  { %1572 = vrcp.f32 %v609_v51 }
 0x940   :  { %v1573_v52 = vpop.eup %1572 }
 0x941   :  { %v613_v55 = vmul.f32 %v1573_v52, %v521_v39 }
 0x9a4   :  { %v616_v53 = vpop.permute.xlu0 %615 }
 0x9a5   :  { %v618_v54 = vmul.f32 %v1573_v52, %v616_v53 }
 0x9a7   :  { %620 = vrot.lane.b32.xlu1 %v618_v54, %s1613_s10  ;;  %v937_v54 = vld [vmem:[#allocation2 + $0xe] sm:$0x3] }
 0xa19   :  { %v621_v56 = vpop.permute.xlu1 %620 }
 0xa1a   :  { %v623_v57 = vadd.f32 %v621_v56, %v613_v55 }
 0xa1c   :  { %1574 = vtanh.f32 %v623_v57 }
 0xa26   :  { %v1575_v58 = vpop.eup %1574 }
 0xa27   :  { %626 = vrot.lane.b32.xlu0 %v1575_v58, %s1612_s3 }
 0xa99   :  { %v627_v59 = vpop.permute.xlu0 %626 }
 0xa9a   :  { %v629_v60 = vmul.f32 %v1573_v52, %v627_v59 }
 0xa9c   :  { %633 = vrot.lane.b32.xlu1 %v629_v60, %s1613_s10 }
 0xb0e   :  { %v634_v61 = vpop.permute.xlu1 %633 }
 0xb0f   :  { %1375 = vmatmul.mubr.msk.f32.vlgmr.msra.gmra.mrb[8].mxu1 %vm225_vm2, %v634_v61 }
 0xb10   :  { %1498 = vmatpush3.bf16.msra.mxu1 %v1698_v25  ;;  %1396 = vmatprep.mubr.msk.f32.mxu1 %vm1610_vm0, %v1611_v11 }
 0xb11   :  { %1499 = vmatprep.subr.bf16.mxu1 %v1609_v6 }
 0xb14   :  { %1501 = vmatpush3.bf16.msra.mxu1 %v1709_v34 }
 0xb15   :  { %1508 = vmatprep.subr.bf16.mxu1 %v1609_v6 }
 0xbe2   :  { %v703_v63 = vpop.f32.mrb[8].mxu1 }
 0xbe3   :  { %v707_v0 = vadd.f32 %v703_v63, %v631_v62  ;;  %v1376_v1 = vpop.f32.mrb[9].mxu1 }
 0xbe5   :  { %1576 = vtanh.f32 %v707_v0  ;;  %v1239_v3 = vmul.f32 -1.442695, %v707_v0 }
 0xbe7   :  { %1578 = vpow2.f32 %v1239_v3  ;;  %v1039_v3 = vld [vmem:[%s1884_s4] sm:$0xff] }
 0xbef   :  { %v1577_v2 = vpop.eup %1576 }
 0xbf0   :  { %717 = vrot.lane.b32.xlu0 %v1577_v2, %s1612_s3 }
 0xbf1   :  { %v1579_v4 = vpop.eup %1578 }
 0xbf2   :  { %v711_v5 = vadd.f32 1.0, %v1579_v4  ;;  %v1040_v4 = vld [vmem:[%s1884_s4 + $0x8] sm:$0xff] }
 0xbf4   :  { %1580 = vrcp.f32 %v711_v5  ;;  %v1041_v5 = vld [vmem:[%s1884_s4 + $0x10] sm:$0xff] }
 0xbfe   :  { %v1581_v7 = vpop.eup %1580 }
 0xbff   :  { %v715_v10 = vmul.f32 %v1581_v7, %v623_v57 }
 0xc62   :  { %v718_v8 = vpop.permute.xlu0 %717 }
 0xc63   :  { %v720_v9 = vmul.f32 %v1581_v7, %v718_v8  ;;  %v1042_v8 = vld [vmem:[%s1884_s4 + $0x18] sm:$0xff] }
 0xc65   :  { %722 = vrot.lane.b32.xlu1 %v720_v9, %s1613_s10  ;;  %v1512_v9 = vpack.c.bf16 %v1042_v8, %v1041_v5 }
 0xcd7   :  { %v723_v12 = vpop.permute.xlu1 %722 }
 0xcd8   :  { %v725_v13 = vadd.f32 %v723_v12, %v715_v10  ;;  %v1126_v12 = vld [vmem:[%s1885_s6] sm:$0xff] }
 0xcda   :  { %1582 = vtanh.f32 %v725_v13 }
 0xce4   :  { %v1583_v14 = vpop.eup %1582 }
 0xce5   :  { %728 = vrot.lane.b32.xlu0 %v1583_v14, %s1612_s3  ;;  %v1128_v14 = vld [vmem:[%s1885_s6 + $0x10] sm:$0xff] }
 0xd57   :  { %v729_v15 = vpop.permute.xlu0 %728 }
 0xd58   :  { %v731_v16 = vmul.f32 %v1581_v7, %v729_v15  ;;  %v1509_v7 = vpack.c.bf16 %v1040_v4, %v1039_v3 }
 0xd5a   :  { %735 = vrot.lane.b32.xlu1 %v731_v16, %s1613_s10  ;;  %v1129_v16 = vld [vmem:[%s1885_s6 + $0x18] sm:$0xff] }
 0xdcc   :  { %v736_v17 = vpop.permute.xlu1 %735 }
 0xdcd   :  { %1386 = vmatmul.mubr.msk.f32.vlgmr.msra.gmra.mrb[2].mxu0 %vm225_vm2, %v736_v17  ;;  %v1518_v17 = vpack.c.bf16 %v1129_v16, %v1128_v14 }
 0xdce   :  { %1504 = vmatpush3.bf16.msra.mxu0 %v1698_v25  ;;  %1407 = vmatprep.mubr.msk.f32.mxu0 %vm1610_vm0, %v1611_v11 }
 0xdcf   :  { %1505 = vmatprep.subr.bf16.mxu0 %v1609_v6 }
 0xdd2   :  { %1507 = vmatpush3.bf16.msra.mxu0 %v1709_v34 }
 0xdd3   :  { %1514 = vmatprep.subr.bf16.mxu0 %v1609_v6 }
 0xea0   :  { %v805_v19 = vpop.f32.mrb[2].mxu0 }
 0xea1   :  { %v809_v20 = vadd.f32 %v805_v19, %v733_v18  ;;  %v1387_v21 = vpop.f32.mrb[3].mxu0  ;;  %v1130_v18 = vld [vmem:[%s1885_s6 + $0x20] sm:$0xff]  ;;  %v1131_v19 = vld [vmem:[%s1885_s6 + $0x28] sm:$0xff] }
 0xea2   :  { %v1521_v21 = vpack.c.bf16 %v1131_v19, %v1130_v18 }
 0xea3   :  { %1584 = vtanh.f32 %v809_v20  ;;  %v1241_v23 = vmul.f32 -1.442695, %v809_v20 }
 0xea5   :  { %1586 = vpow2.f32 %v1241_v23  ;;  %v1132_v23 = vld [vmem:[%s1885_s6 + $0x30] sm:$0xff] }
 0xead   :  { %v1585_v22 = vpop.eup %1584 }
 0xeae   :  { %819 = vrot.lane.b32.xlu0 %v1585_v22, %s1612_s3 }
 0xeaf   :  { %v1587_v25 = vpop.eup %1586 }
 0xeb0   :  { %v813_v24 = vadd.f32 1.0, %v1587_v25  ;;  %v1133_v25 = vld [vmem:[%s1885_s6 + $0x38] sm:$0xff] }
 0xeb2   :  { %1588 = vrcp.f32 %v813_v24 }
 0xebc   :  { %v1589_v26 = vpop.eup %1588 }
 0xebd   :  { %v817_v34 = vmul.f32 %v1589_v26, %v725_v13  ;;  %v1127_v13 = vld [vmem:[%s1885_s6 + $0x8] sm:$0xff] }
 0xebe   :  { %v1515_v15 = vpack.c.bf16 %v1127_v13, %v1126_v12 }
 0xf20   :  { %v820_v27 = vpop.permute.xlu0 %819 }
 0xf21   :  { %v822_v28 = vmul.f32 %v1589_v26, %v820_v27  ;;  %v1134_v27 = vld [vmem:[%s1885_s6 + $0x40] sm:$0xff] }
 0xf23   :  { %824 = vrot.lane.b32.xlu1 %v822_v28, %s1613_s10  ;;  %v1135_v28 = vld [vmem:[%s1885_s6 + $0x48] sm:$0xff] }
 0xf95   :  { %v825_v29 = vpop.permute.xlu1 %824 }
 0xf96   :  { %v827_v30 = vadd.f32 %v825_v29, %v817_v34  ;;  %v1527_v34 = vpack.c.bf16 %v1135_v28, %v1134_v27  ;;  %v1136_v29 = vld [vmem:[%s1885_s6 + $0x50] sm:$0xff] }
 0xf98   :  { %1590 = vtanh.f32 %v827_v30 }
 0xfa2   :  { %v1591_v31 = vpop.eup %1590 }
 0xfa3   :  { %830 = vrot.lane.b32.xlu0 %v1591_v31, %s1612_s3 }
0x1015   :  { %v831_v32 = vpop.permute.xlu0 %830 }
0x1016   :  { %v833_v33 = vmul.f32 %v1589_v26, %v831_v32  ;;  %v1524_v26 = vpack.c.bf16 %v1133_v25, %v1132_v23  ;;  %v1138_v32 = vld [vmem:[%s1885_s6 + $0x60] sm:$0xff] }
0x1018   :  { %837 = vrot.lane.b32.xlu1 %v833_v33, %s1613_s10  ;;  %v1139_v33 = vld [vmem:[%s1885_s6 + $0x68] sm:$0xff] }
0x108a   :  { %v838_v35 = vpop.permute.xlu1 %837 }
0x108b   :  { %1397 = vmatmul.mubr.msk.f32.vlgmr.msra.gmra.mrb[10].mxu1 %vm225_vm2, %v838_v35  ;;  %v1533_v35 = vpack.c.bf16 %v1139_v33, %v1138_v32 }
0x108c   :  { %1418 = vmatprep.mubr.msk.f32.mxu1 %vm1610_vm0, %v1611_v11  ;;  %1510 = vmatpush3.bf16.msra.mxu1 %v1509_v7 }
0x108d   :  { %1511 = vmatprep.subr.bf16.mxu1 %v1609_v6 }
0x1090   :  { %1513 = vmatpush3.bf16.msra.mxu1 %v1512_v9 }
0x115e   :  { %v907_v37 = vpop.f32.mrb[10].mxu1 }
0x115f   :  { %v911_v38 = vadd.f32 %v907_v37, %v835_v36  ;;  %v1398_v39 = vpop.f32.mrb[11].mxu1  ;;  %v1140_v37 = vld [vmem:[%s1885_s6 + $0x70] sm:$0xff] }
0x1161   :  { %1592 = vtanh.f32 %v911_v38  ;;  %v1243_v41 = vmul.f32 -1.442695, %v911_v38  ;;  %v1141_v38 = vld [vmem:[%s1885_s6 + $0x78] sm:$0xff] }
0x1162   :  { %v1536_v39 = vpack.c.bf16 %v1141_v38, %v1140_v37 }
0x1163   :  { %1594 = vpow2.f32 %v1243_v41 }
0x116b   :  { %v1593_v40 = vpop.eup %1592 }
0x116c   :  { %921 = vrot.lane.b32.xlu0 %v1593_v40, %s1612_s3  ;;  %v1246_v40 = vld [vmem:[%s1886_s5] ss:$0 sm:$0xff] }
0x116d   :  { %v1595_v42 = vpop.eup %1594 }
0x116e   :  { %v915_v43 = vadd.f32 1.0, %v1595_v42 }
0x1170   :  { %1596 = vrcp.f32 %v915_v43 }
0x117a   :  { %v1597_v44 = vpop.eup %1596 }
0x117b   :  { %v919_v47 = vmul.f32 %v1597_v44, %v827_v30  ;;  %v1137_v30 = vld [vmem:[%s1885_s6 + $0x58] sm:$0xff] }
0x117c   :  { %v1530_v31 = vpack.c.bf16 %v1137_v30, %v1136_v29 }
0x11de   :  { %v922_v45 = vpop.permute.xlu0 %921 }
0x11df   :  { %v924_v46 = vmul.f32 %v1597_v44, %v922_v45 }
0x11e1   :  { %926 = vrot.lane.b32.xlu1 %v924_v46, %s1613_s10 }
0x1253   :  { %v927_v48 = vpop.permute.xlu1 %926 }
0x1254   :  { %v929_v49 = vadd.f32 %v927_v48, %v919_v47 }
0x1256   :  { %1598 = vtanh.f32 %v929_v49 }
0x1260   :  { %v1599_v50 = vpop.eup %1598 }
0x1261   :  { %932 = vrot.lane.b32.xlu0 %v1599_v50, %s1612_s3 }
0x12d3   :  { %v933_v51 = vpop.permute.xlu0 %932 }
0x12d4   :  { %v935_v52 = vmul.f32 %v1597_v44, %v933_v51  ;;  %v1248_v44 = vld [vmem:[%s1887_s7] ss:$0 sm:$0xff] }
0x12d6   :  { %939 = vrot.lane.b32.xlu1 %v935_v52, %s1613_s10 }
0x1348   :  { %v940_v53 = vpop.permute.xlu1 %939 }
0x1349   :  { %1408 = vmatmul.mubr.msk.f32.vlgmr.msra.gmra.mrb[4].mxu0 %vm225_vm2, %v940_v53 }
0x134a   :  { %1453 = vmatprep.mubr.msk.f32.mxu0 %vm1610_vm0, %v1611_v11  ;;  %1516 = vmatpush3.bf16.msra.mxu0 %v1515_v15 }
0x134b   :  { %1517 = vmatprep.subr.bf16.mxu0 %v1609_v6 }
0x134e   :  { %1519 = vmatpush3.bf16.msra.mxu0 %v1518_v17 }
0x134f   :  { %1520 = vmatprep.subr.bf16.mxu0 %v1609_v6 }
0x1352   :  { %1522 = vmatpush3.bf16.msra.mxu0 %v1521_v21 }
0x1353   :  { %1523 = vmatprep.subr.bf16.mxu0 %v1609_v6 }
0x1356   :  { %1525 = vmatpush3.bf16.msra.mxu0 %v1524_v26 }
0x1357   :  { %1526 = vmatprep.subr.bf16.mxu0 %v1609_v6 }
0x135a   :  { %1528 = vmatpush3.bf16.msra.mxu0 %v1527_v34 }
0x135b   :  { %1529 = vmatprep.subr.bf16.mxu0 %v1609_v6 }
0x135e   :  { %1531 = vmatpush3.bf16.msra.mxu0 %v1530_v31 }
0x135f   :  { %1532 = vmatprep.subr.bf16.mxu0 %v1609_v6 }
0x1362   :  { %1534 = vmatpush3.bf16.msra.mxu0 %v1533_v35 }
0x1363   :  { %1535 = vmatprep.subr.bf16.mxu0 %v1609_v6 }
0x1366   :  { %1537 = vmatpush3.bf16.msra.mxu0 %v1536_v39 }
0x141c   :  { %v1009_v55 = vpop.f32.mrb[4].mxu0 }
0x141d   :  { %v1013_v56 = vadd.f32 %v1009_v55, %v937_v54  ;;  %v1409_v57 = vpop.f32.mrb[5].mxu0 }
0x141f   :  { %1600 = vtanh.f32 %v1013_v56  ;;  %v1245_v59 = vmul.f32 -1.442695, %v1013_v56 }
0x1421   :  { %1602 = vpow2.f32 %v1245_v59 }
0x1429   :  { %v1601_v58 = vpop.eup %1600 }
0x142a   :  { %1023 = vrot.lane.b32.xlu0 %v1601_v58, %s1612_s3 }
0x142b   :  { %v1603_v60 = vpop.eup %1602 }
0x142c   :  { %v1017_v61 = vadd.f32 1.0, %v1603_v60 }
0x142e   :  { %1604 = vrcp.f32 %v1017_v61 }
0x1438   :  { %v1605_v62 = vpop.eup %1604 }
0x1439   :  { %v1021_v1 = vmul.f32 %v1605_v62, %v929_v49 }
0x149c   :  { %v1024_v63 = vpop.permute.xlu0 %1023 }
0x149d   :  { %v1026_v0 = vmul.f32 %v1605_v62, %v1024_v63 }
0x149f   :  { %1028 = vrot.lane.b32.xlu1 %v1026_v0, %s1613_s10 }
0x1511   :  { %v1029_v11 = vpop.permute.xlu1 %1028 }
0x1512   :  { %v1031_v2 = vadd.f32 %v1029_v11, %v1021_v1 }
0x1514   :  { %1606 = vtanh.f32 %v1031_v2 }
0x151e   :  { %v1607_v10 = vpop.eup %1606 }
0x151f   :  { %1034 = vrot.lane.b32.xlu0 %v1607_v10, %s1612_s3 }
0x1591   :  { %v1035_v20 = vpop.permute.xlu0 %1034 }
0x1592   :  { %v1037_v22 = vmul.f32 %v1605_v62, %v1035_v20 }
0x1594   :  { %v1038_v24 = vmax.f32 %v1037_v22, 0.0 }
0x1596   :  { %1051 = vrot.lane.b32.xlu1 %v1038_v24, %s1613_s10 }
0x1608   :  { %v1052_v36 = vpop.permute.xlu1 %1051 }
0x1609   :  { %1419 = vmatmul.mubr.msk.f32.vlgmr.msra.gmra.mrb[12].mxu1 %vm225_vm2, %v1052_v36 }
0x16dc   :  { %v1121_v41 = vpop.f32.mrb[12].mxu1 }
0x16dd   :  { %v1122_v42 = vadd.f32 %v1246_v40, %v1121_v41  ;;  %v1420_v6 = vpop.f32.mrb[13].mxu1 }
0x16df   :  { %v1125_v43 = vmax.f32 %v1122_v42, 0.0 }
0x16e1   :  { %1454 = vmatmul.mubr.f32.vlgmr.msra.gmra.mrb[6].mxu0 %v1125_v43 }
0x17b4   :  { %v1215_v45 = vpop.f32.mrb[6].mxu0 }
0x17b5   :  { %v1216_v46 = vadd.f32 %v1248_v44, %v1215_v45  ;;  %v1455_v47 = vpop.f32.mrb[7].mxu0 }
0x17b7   :  { %1219 = vst [vmem:[%s1888_s8] sm:$0x3] %v1216_v46 }

</bundles_post_ra>
